<compile_context>
chip_gen: v6e
topology: v6e:2x2x1
jax: 0.10.0
libtpu: 0.0.40
codegen_flags: <defaults>
</compile_context>

<pallas_src>
import math

import numpy as np
import jax
import jax.numpy as jnp
from jax.experimental import pallas as pl
from jax.experimental.pallas import tpu as pltpu


def _bilinear_matrix(out_size, in_size, scale=None):
    """Row i holds the PyTorch align_corners=False bilinear weights for output i."""
    if scale is None:
        scale = in_size / out_size
    dst = np.arange(out_size, dtype=np.float64)
    src = (dst + 0.5) * scale - 0.5
    src = np.maximum(src, 0.0)                 # PyTorch clamps negative src to 0
    i0 = np.minimum(np.floor(src).astype(np.int64), in_size - 1)
    i1 = np.minimum(i0 + 1, in_size - 1)
    frac = src - i0
    w = np.zeros((out_size, in_size), dtype=np.float32)
    rows = np.arange(out_size)
    np.add.at(w, (rows, i0), (1.0 - frac).astype(np.float32))
    np.add.at(w, (rows, i1), frac.astype(np.float32))
    return w


def _interp_kernel(x_ref, wh_ref, wwt_ref, o_ref):
    # x_ref:   (B, H_in, W_in)     native dtype
    # wh_ref:  (TH_out, H_in)      f32   (row tile of the H-interp matrix)
    # wwt_ref: (W_in, W_out)       f32
    # o_ref:   (B, TH_out, W_out)  native dtype
    b, h_in, w_in = x_ref.shape
    th_out = wh_ref.shape[0]
    w_out = wwt_ref.shape[1]

    wh = wh_ref[...]          # loop-invariant, loaded once per block
    wwt = wwt_ref[...]

    # Static (trace-time) choice of contraction order: fewest MXU FLOPs.
    h_first = (th_out * w_in * (h_in + w_out)) <= (h_in * w_out * (w_in + th_out))

    @pl.loop(0, b)
    def _(i):
        xi = x_ref[i].astype(jnp.float32)                               # (H_in, W_in)
        if h_first:
            yi = jnp.dot(wh, xi, preferred_element_type=jnp.float32)    # (TH_out, W_in)
            oi = jnp.dot(yi, wwt, preferred_element_type=jnp.float32)   # (TH_out, W_out)
        else:
            yi = jnp.dot(xi, wwt, preferred_element_type=jnp.float32)   # (H_in, W_out)
            oi = jnp.dot(wh, yi, preferred_element_type=jnp.float32)    # (TH_out, W_out)
        o_ref[i] = oi.astype(o_ref.dtype)


def _output_size_and_scales(h_in, w_in, size, scale_factor):
    if size is not None:
        h_out, w_out = (size, size) if isinstance(size, int) else tuple(size)
        return int(h_out), int(w_out), None, None
    sf = scale_factor
    sfh, sfw = (sf, sf) if not isinstance(sf, (tuple, list)) else tuple(sf)
    h_out = int(math.floor(h_in * sfh))
    w_out = int(math.floor(w_in * sfw))
    # PyTorch (recompute_scale_factor default) uses 1/scale_factor directly in
    # the source-coordinate transform, not in/out recomputed from floored size.
    return h_out, w_out, 1.0 / float(sfh), 1.0 / float(sfw)


def interpolate_bilinear(x, size=None, scale_factor=None):
    """Bilinear resize of an NCHW tensor, align_corners=False (PyTorch semantics)."""
    n, c, h_in, w_in = x.shape
    h_out, w_out, sc_h, sc_w = _output_size_and_scales(h_in, w_in, size, scale_factor)

    planes = n * c
    itemsize = x.dtype.itemsize

    # --- output-row tiling (gives pipelining / megacore work when planes are few)
    if planes >= 8 or h_out <= 64:
        th_out = h_out
    else:
        row_steps_target = -(-8 // planes)                  # aim for ~8 grid steps total
        th_out = -(-h_out // row_steps_target)
        th_out = -(-th_out // 8) * 8                         # (8,128) rule for a partial dim
        if th_out >= h_out:
            th_out = h_out
    row_steps = -(-h_out // th_out)
    h_out_pad = row_steps * th_out

    # --- interpolation matrices (static, f32) -----------------------------
    wh_np = _bilinear_matrix(h_out, h_in, sc_h)              # (H_out, H_in)
    if h_out_pad != h_out:
        wh_np = np.pad(wh_np, ((0, h_out_pad - h_out), (0, 0)))
    wh = jnp.asarray(wh_np)                                  # (H_out_pad, H_in) f32
    wwt = jnp.asarray(_bilinear_matrix(w_out, w_in, sc_w).T)  # (W_in, W_out)  f32

    # --- plane batch per grid step (VMEM budget) ---------------------------
    io_per_plane = 2 * (h_in * w_in + th_out * w_out) * itemsize          # dbl-buffered blocks
    weight_bytes = 2 * (th_out * h_in + w_in * w_out) * 4                 # dbl-buffered weights
    temp_bytes = (h_in * w_in + th_out * w_in + h_in * w_out + th_out * w_out) * 4
    budget = 12 * 1024 * 1024
    b_max = max(1, (budget - weight_bytes - temp_bytes) // io_per_plane)
    if row_steps == 1 and planes >= 2:
        b = min(b_max, -(-planes // 2))      # keep >= 2 grid steps for the v7x megacore
    else:
        b = min(b_max, planes)
    b = int(max(1, b))

    plane_steps = -(-planes // b)
    planes_pad = plane_steps * b

    x_flat = x.reshape(planes, h_in, w_in)                   # native dtype, no up-cast
    if planes_pad != planes:
        x_flat = jnp.pad(x_flat, ((0, planes_pad - planes), (0, 0), (0, 0)))

    out = pl.pallas_call(
        _interp_kernel,
        out_shape=jax.ShapeDtypeStruct((planes_pad, h_out_pad, w_out), x.dtype),
        grid_spec=pltpu.PrefetchScalarGridSpec(
            num_scalar_prefetch=0,
            grid=(plane_steps, row_steps),
            in_specs=[
                pl.BlockSpec((b, h_in, w_in), lambda p, r: (p, 0, 0)),   # revisited over r
                pl.BlockSpec((th_out, h_in), lambda p, r: (r, 0)),
                pl.BlockSpec((w_in, w_out), lambda p, r: (0, 0)),        # revisited always
            ],
            out_specs=pl.BlockSpec((b, th_out, w_out), lambda p, r: (p, r, 0)),
        ),
        compiler_params=pltpu.CompilerParams(
            dimension_semantics=("parallel", "parallel"),
            vmem_limit_bytes=32 * 1024 * 1024,
        ),
    )(x_flat, wh, wwt)

    out = out[:planes, :h_out, :]
    return out.reshape(n, c, h_out, w_out)


class Interpolate:
    """JAX/Pallas equivalent of the PyTorch Interpolate module (mode='bilinear')."""

    def __init__(self, size=None, scale_factor=None, mode="bilinear"):
        assert mode == "bilinear", "only bilinear mode implemented"
        self.size = size
        self.scale_factor = scale_factor

    def __call__(self, x):
        return interpolate_bilinear(x, size=self.size, scale_factor=self.scale_factor)


if __name__ == "__main__":
    key = jax.random.PRNGKey(0)

    # ---- test 1: scale_factor path, f32, many small planes -----------------
    x = jax.random.normal(key, (2, 4, 16, 16), dtype=jnp.float32)     # NCHW
    y = jax.block_until_ready(Interpolate(scale_factor=2)(x))
    assert y.shape == (2, 4, 32, 32), y.shape
    wh = jnp.asarray(_bilinear_matrix(32, 16, 0.5))
    ww = jnp.asarray(_bilinear_matrix(32, 16, 0.5))
    ref = jnp.einsum("oh,nchw,pw->ncop", wh, x, ww)
    np.testing.assert_allclose(np.asarray(y), np.asarray(ref), rtol=1e-5, atol=1e-5)

    # ---- test 2: few large-ish planes -> exercises row tiling + padding ----
    x2 = jax.random.normal(jax.random.PRNGKey(1), (1, 2, 25, 25), dtype=jnp.float32)
    y2 = jax.block_until_ready(Interpolate(scale_factor=4)(x2))
    assert y2.shape == (1, 2, 100, 100), y2.shape
    wh2 = jnp.asarray(_bilinear_matrix(100, 25, 0.25))
    ww2 = jnp.asarray(_bilinear_matrix(100, 25, 0.25))
    ref2 = jnp.einsum("oh,nchw,pw->ncop", wh2, x2, ww2)
    np.testing.assert_allclose(np.asarray(y2), np.asarray(ref2), rtol=1e-4, atol=1e-4)

    # ---- test 3: size= path, bf16 native-dtype I/O --------------------------
    x3 = jax.random.normal(jax.random.PRNGKey(2), (2, 4, 16, 16), dtype=jnp.bfloat16)
    y3 = jax.block_until_ready(Interpolate(size=32)(x3))
    assert y3.shape == (2, 4, 32, 32) and y3.dtype == jnp.bfloat16
    ref3 = jnp.einsum("oh,nchw,pw->ncop", wh, x3.astype(jnp.float32), ww)
    np.testing.assert_allclose(np.asarray(y3.astype(jnp.float32)), np.asarray(ref3),
                               rtol=2e-2, atol=2e-2)

    print("KERNEL_OK")
</pallas_src>

<mosaic_0001>
module attributes {stable_mosaic.version = 11 : i64} {
  func.func @_interp_kernel(%arg0: i32, %arg1: i32, %arg2: memref<4x16x16xf32, #tpu.memory_space<vmem>>, %arg3: memref<32x16xf32, #tpu.memory_space<vmem>>, %arg4: memref<16x32xf32, #tpu.memory_space<vmem>>, %arg5: memref<4x32x32xf32, #tpu.memory_space<vmem>>) attributes {dimension_semantics = [#tpu.dimension_semantics<parallel>, #tpu.dimension_semantics<parallel>], iteration_bounds = array<i64: 2, 1>, scalar_prefetch = 0 : i64, scratch_operands = 0 : i64, tpu.core_type = #tpu.core_type<tc>, window_params = [{transform_indices = @transform_0, window_bounds = array<i64: 4, 16, 16>}, {transform_indices = @transform_1, window_bounds = array<i64: 32, 16>}, {pipeline_mode = #tpu.pipeline_mode<synchronous>, transform_indices = @transform_2, window_bounds = array<i64: 16, 32>}, {transform_indices = @transform_3, window_bounds = array<i64: 4, 32, 32>}]} {
    %c0 = arith.constant 0 : index
    %c0_0 = arith.constant 0 : index
    %0 = vector.load %arg3[%c0, %c0_0] : memref<32x16xf32, #tpu.memory_space<vmem>>, vector<32x16xf32>
    %c0_1 = arith.constant 0 : index
    %c0_2 = arith.constant 0 : index
    %1 = vector.load %arg4[%c0_1, %c0_2] : memref<16x32xf32, #tpu.memory_space<vmem>>, vector<16x32xf32>
    %c0_i32 = arith.constant 0 : i32
    %c4_i32 = arith.constant 4 : i32
    %2 = arith.addi %c0_i32, %c4_i32 : i32
    %c1_i32 = arith.constant 1 : i32
    scf.for %arg6 = %c0_i32 to %2 step %c1_i32  : i32 {
      %c1_i32_4 = arith.constant 1 : i32
      %3 = arith.muli %arg6, %c1_i32_4 : i32
      %c0_i32_5 = arith.constant 0 : i32
      %4 = arith.addi %c0_i32_5, %3 : i32
      %5 = arith.index_cast %4 : i32 to index
      %c0_6 = arith.constant 0 : index
      %c0_7 = arith.constant 0 : index
      %6 = vector.load %arg2[%5, %c0_6, %c0_7] : memref<4x16x16xf32, #tpu.memory_space<vmem>>, vector<1x16x16xf32>
      %7 = vector.shape_cast %6 : vector<1x16x16xf32> to vector<16x16xf32>
      %cst = arith.constant dense<0.000000e+00> : vector<32x16xf32>
      %8 = tpu.matmul %0, %7, %cst {dimension_numbers = #tpu.dot_dimension_numbers<[1], [0], [0], [1], [0, 0, 1, 1], [], []>} : vector<32x16xf32>, vector<16x16xf32>, vector<32x16xf32> -> vector<32x16xf32>
      %cst_8 = arith.constant dense<0.000000e+00> : vector<32x32xf32>
      %9 = tpu.matmul %8, %1, %cst_8 {dimension_numbers = #tpu.dot_dimension_numbers<[1], [0], [0], [1], [0, 0, 1, 1], [], []>} : vector<32x16xf32>, vector<16x32xf32>, vector<32x32xf32> -> vector<32x32xf32>
      %10 = arith.index_cast %4 : i32 to index
      %c0_9 = arith.constant 0 : index
      %c0_10 = arith.constant 0 : index
      %11 = vector.load %arg5[%10, %c0_9, %c0_10] : memref<4x32x32xf32, #tpu.memory_space<vmem>>, vector<1x32x32xf32>
      %12 = vector.shape_cast %11 : vector<1x32x32xf32> to vector<32x32xf32>
      %13 = vector.shape_cast %9 : vector<32x32xf32> to vector<1x32x32xf32>
      tpu.vector_store %arg5[%10, %c0_9, %c0_10], %13 {strides = array<i32>} : memref<4x32x32xf32, #tpu.memory_space<vmem>>, vector<1x32x32xf32>,
    }
    %c4_i32_3 = arith.constant 4 : i32
    return
  }
  func.func @transform_0(%arg0: i32, %arg1: i32) -> (i32, i32, i32) {
    %c0_i32 = arith.constant 0 : i32
    %c0_i32_0 = arith.constant 0 : i32
    %c0_i32_1 = arith.constant 0 : i32
    return %arg0, %c0_i32, %c0_i32_0 : i32, i32, i32
  }
  func.func @transform_1(%arg0: i32, %arg1: i32) -> (i32, i32) {
    %c0_i32 = arith.constant 0 : i32
    %c0_i32_0 = arith.constant 0 : i32
    return %arg1, %c0_i32 : i32, i32
  }
  func.func @transform_2(%arg0: i32, %arg1: i32) -> (i32, i32) {
    %c0_i32 = arith.constant 0 : i32
    %c0_i32_0 = arith.constant 0 : i32
    %c0_i32_1 = arith.constant 0 : i32
    return %c0_i32, %c0_i32_0 : i32, i32
  }
  func.func @transform_3(%arg0: i32, %arg1: i32) -> (i32, i32, i32) {
    %c0_i32 = arith.constant 0 : i32
    %c0_i32_0 = arith.constant 0 : i32
    return %arg0, %arg1, %c0_i32 : i32, i32, i32
  }
}

</mosaic_0001>

<bundles_post_ra>
// kernel: tpu_custom_call.1
= control target key start
LH: loop header
LB: loop body
LE: loop exit
PB: predicated region body
PF: predicated region fallthrough
CT: control target
= control target key end

     0   :  { %8 = vsyncpa [#allocation3], 0  ;;  %s1044_s0 = inlined_call_operand.hbm [shape: f32[8,16,16], index: 0, kind: input, shape index: {}]   ;;  %s1045_s1 = inlined_call_operand.vmem [shape: f32[32,16], index: 1, kind: input, shape index: {}]   ;;  %s1046_s2 = inlined_call_operand.vmem [shape: f32[16,32], index: 2, kind: input, shape index: {}]   ;;  %s1047_s3 = inlined_call_operand.hbm [shape: f32[8,32,32], index: 3, kind: output, shape index: {}]  }
   0x1   :  { %10 = vsyncpa [#allocation3 + $0x1], 0 }
   0x2   :  { %11 = vsyncpa [#allocation4], 0 }
   0x3   :  { %13 = vsyncpa [#allocation4 + $0x1], 0  ;;  %s854_s12 = smov 0   ;;  %s856_s13 = smov 0  }
   0x4   :  { %s858_s14 = smov 0   ;;  %s860_s15 = smov 0  }
   0x5   :  { %s862_s16 = smov 0   ;;  %s864_s17 = smov 0  }
   0x6 LB: > { %s572_s18 = sadd.s32 4294967295, %s822_s17   ;;  %s573_s19 = sadd.s32 4294967294, %s822_s17   ;;  %s822_s17 = sphi %s864_s17, %s19_s17   ;;  %s818_s16 = sphi %s862_s16, %s1058_s16   ;;  %s814_s15 = sphi %s860_s15, %s1057_s15   ;;  %s810_s14 = sphi %s858_s14, %s1056_s14   ;;  %s806_s13 = sphi %s856_s13, %s1055_s13   ;;  %s802_s12 = sphi %s854_s12, %s1054_s12  }
   0x7   : > { %s31_s20 = sadd.s32 1, %s818_s16  ;;  %s38_s21 = sadd.s32 1, %s810_s14 }
   0x8   : > { %p33_p0 = scmp.ge.s32.totalorder %s31_s20, 2  ;;  %p45_p1 = scmp.ne.s32.totalorder %s810_s14, %s806_s13 }
   0x9   : > { %p46_p2 = scmp.eq.s32.totalorder %s822_s17, 0  ;;  %p51_p3 = scmp.ne.s32.totalorder %s806_s13, %s802_s12 }
   0xa   : > { %s1060_s20 = smov (%p33_p0, %s31_s20), 0  ;;  %p52_p5 = scmp.eq.s32.totalorder %s572_s18, 0 }
   0xb   : > { %p895_p4 = por %p46_p2, %p45_p1  ;;  %s35_s23 = ssub.s32 %s818_s16, %s1060_s20 }
   0xc   : > { %p124_p6 = scmp.eq.s32.totalorder %s572_s18, 1  ;;  %p36_p7 = scmp.eq.s32.totalorder %s35_s23, 0 }
   0xd   : > { %p901_p8 = por %p52_p5, %p51_p3  ;;  %p130_p10 = scmp.eq.s32.totalorder %s573_s19, 1 }
   0xe   : > { %p905_p9 = por %p124_p6, %p45_p1  ;;  %p648_p13 = scmp.lt.s32.totalorder %s822_s17, 2 }
   0xf   : > { %s910_s26 = scalar_select %p36_p7, %s810_s14, %s38_s21  }
  0x10   : > { %p912_p11 = por %p130_p10, %p51_p3  ;;  %s162_s28 = sand.u32 1, %s810_s14  }
  0x11   : > { %s577_s29 = sshll.u32 %s162_s28, 6  ;;  %s601_s30 = sshll.u32 %s818_s16, 10 }
  0x12   : > { %s173_s6 = scalar_lea.hbm %s1044_s0, %s601_s30  ;;  %s166_s7 = scalar_lea.vmem [#allocation2], %s577_s29 }
  0x13   : > { %s174_s8 = sshll.u32 %s166_s7, 4  ;;  %p925_p0 = pnand %p648_p13, %p895_p4  ;;  %s175_s8 = int_to_ptr.vmem [resolvable:$true] %s174_s8 }
  0x14   : > { %p581_p1 = scmp.ge.s32.totalorder %s822_s17, 1  ;;  %s163_s10 = scalar_lea.sflag [#allocation3], %s162_s28 }
  0x15   : > { %p712_p2 = pneg %p925_p0  ;;  %s723_s11 = scalar_lea.vmem %s175_s8, 1024 }
  0x16   : > { %p724_p3 = scmp.ne.s32.totalorder %s175_s8, %s723_s11  ;;  %s828_s18 = smov [#allocation2]  }
  0x17   : > { %s728_s19 = sshll.u32 %s828_s18, 4  ;;  %s729_s19 = int_to_ptr.vmem [resolvable:$false] %s728_s19 }
  0x18   : > { %p726_p5 = pnand %p724_p3, %p712_p2  ;;  %s730_s21 = scalar_lea.vmem %s729_s19, 2048 }
  0x19   : > { %p731_p7 = scmp.lt.s32.totalorder %s175_s8, %s729_s19  ;;  %p732_p10 = scmp.lt.s32.totalorder %s730_s21, %s723_s11 }
  0x1a   : > { %p727_p6 = pneg %p726_p5 }
  0x1b   : > { %p733_p12 = por %p732_p10, %p731_p7 }
  0x1d   : > { %p734_p4 = pnand %p733_p12, %p727_p6 }
  0x1f   : > { %737 = shalt.err (!%p734_p4)
}
  0x20   : > { %s829_s22 = smov 128   ;;  %s830_s23 = smov 8  }
  0x21   : > { %643 = dma.hbm_to_vmem [thread:$0]  (!%p925_p0), %s173_s6, 1024, %s175_s8, %s163_s10, %s829_s22, %s829_s22, %s830_s23  }
  0x22   : > { %p182_p13 = scmp.lt.s32.totalorder %s822_s17, 3 }
  0x24   : > { %p183_p2 = pnand %p581_p1, %p182_p13 }
  0x25   : > { %s938_s28 = sand.u32 (!%p183_p2), 1, %s806_s13  }
  0x26   : > { %186 = sbr.rel (%p183_p2) target bundleno = 463 (0x1cf), region = 32  ;;  %s582_s29 = sshll.u32 (!%p183_p2), %s938_s28, 6 }
  0x27   : > { %s189_s30 = scalar_lea.sflag (!%p183_p2), [#allocation3], %s938_s28  ;;  %s942_s4 = scalar_lea.vmem (!%p183_p2), [#allocation2], %s582_s29 }
  0x2b   : > { %793 = dma.done.wait (%p901_p8), %s189_s30, 1024  }
  0x2c   : > { %795 = vsyncadd (%p901_p8), %s189_s30, 4294966272  ;;  %s583_s5 = sshll.u32 %s938_s28, 7  ;;  %v229_v0 = vld [vmem:[%s1045_s1] sm:$0xff]  ;;  %v230_v1 = vld [vmem:[%s1045_s1 + $0x8] sm:$0xff]  ;;  %s969_s30 = smov 0  }
  0x2d   : > { %v231_v2 = vld [vmem:[%s1045_s1 + $0x10] sm:$0xff]  ;;  %v232_v3 = vld [vmem:[%s1045_s1 + $0x18] sm:$0xff]  ;;  %v233_v4 = vld [vmem:[%s1046_s2] sm:$0xff]  ;;  %s967_s29 = scalar_lea.vmem [#allocation5], %s583_s5 }
  0x2e   : > { %v234_v5 = vld [vmem:[%s1046_s2 + $0x8] sm:$0xff] }
  0x2f LB: >> { %vm245_vm0 = vcmask 130048   ;;  %626 = vmatprep.subr.mxu1 %v234_v5  ;;  %s584_s6 = sshll.u32 %s826_s30, 4  ;;  %s593_s5 = sshll.u32 %s826_s30, 5  ;;  %vm442_vm1 = vcmask 261120   ;;  %s826_s30 = sphi %s969_s30, %s240_s30  }
  0x30   : >> { %620 = vmatprep.mubr.msk.f32.mxu0 %vm245_vm0, %v229_v0  ;;  %627 = vmatpush3.msra.mxu1 %v234_v5  ;;  %s242_s7 = scalar_lea.vmem %s942_s4, %s584_s6 [#allocation2]  ;;  %s441_s8 = scalar_lea.vmem %s967_s29, %s593_s5 [#allocation5] }
  0x31   : >> { %628 = vmatprep.subr.mxu1 %v233_v4  ;;  %v244_v6 = vld [vmem:[%s242_s7 + $0x8] sm:$0xff]  ;;  %v243_v7 = vld [vmem:[%s242_s7] sm:$0xff]  ;;  %s240_s30 = sadd.s32 1, %s826_s30  }
  0x32   : >> { %629 = vmatpush3.msra.mxu1 %v233_v4  ;;  %616 = vmatprep.subr.mxu0 %v244_v6  ;;  %p237_p8 = scmp.ge.s32.totalorder %s240_s30, 4  }
  0x33   : >> { %617 = vmatpush3.msra.mxu0 %v244_v6  ;;  %s603_s9 = sshll.u32 (%p237_p8), %s814_s15, 11  ;;  %s464_s19 = sshll.u32 (%p237_p8), %s967_s29, 4  ;;  %s996_s19 = int_to_ptr.vmem [resolvable:$true] %s464_s19 }
  0x34   : >> { %618 = vmatprep.subr.mxu0 %v243_v7  ;;  %s993_s18 = scalar_lea.hbm (%p237_p8), %s1047_s3, %s603_s9  ;;  %s448_s24 = scalar_lea.sflag (%p237_p8), [#allocation4], %s938_s28 }
  0x35   : >> { %619 = vmatpush3.msra.mxu0 %v243_v7  ;;  %s738_s21 = scalar_lea.vmem (%p237_p8), %s996_s19, 2048  ;;  %s831_s4 = smov (%p237_p8), [#allocation5]  }
  0x36   : >> { %621 = vmatmul.mubr.msk.f32.vlgmr.msra.gmra.mxu0 %vm245_vm0, %v230_v1  ;;  %p739_p12 = scmp.ne.s32.totalorder (%p237_p8), %s996_s19, %s738_s21  ;;  %s742_s22 = sshll.u32 (%p237_p8), %s831_s4, 4  ;;  %s743_s22 = int_to_ptr.vmem [resolvable:$false] %s742_s22 }
  0x37   : >> { %623 = vmatprep.mubr.msk.f32.mxu0 %vm245_vm0, %v231_v2  ;;  %s744_s15 = scalar_lea.vmem (%p237_p8), %s743_s22, 4096  ;;  %p745_p3 = scmp.lt.s32.totalorder (%p237_p8), %s996_s19, %s743_s22 }
  0x38   : > { %p740_p0 = pnand (%p237_p8), %p739_p12, %p905_p9  ;;  %p746_p5 = scmp.lt.s32.totalorder (%p237_p8), %s744_s15, %s738_s21 }
  0x3a   : >> { %624 = vmatmul.mubr.msk.f32.gmra.mxu0 %vm245_vm0, %v232_v3  ;;  %p741_p1 = pneg (%p237_p8), %p740_p0  ;;  %p747_p6 = por (%p237_p8), %p746_p5, %p745_p3 }
  0x3c   : > { %p748_p7 = pnand (%p237_p8), %p747_p6, %p741_p1 }
  0xf6   : >> { %v622_v8 = vpop.f32.mrf.mxu0 }
  0xf8   : >> { %v324_v9 = vpop.f32.mrf.mxu0 }
  0xf9   : >> { %630 = vmatprep.mubr.msk.f32.mxu1 %vm245_vm0, %v324_v9 }
  0xfa   : >> { %v625_v10 = vpop.f32.mrf.mxu0  ;;  %631 = vmatmul.mubr.msk.f32.vlgmr.msra.gmra.mxu1 %vm245_vm0, %v622_v8 }
  0xfc   : >> { %v334_v11 = vpop.f32.mrf.mxu0 }
  0xfd   : >> { %633 = vmatprep.mubr.msk.f32.mxu1 %vm245_vm0, %v334_v11 }
  0xfe   : >> { %634 = vmatmul.mubr.msk.f32.gmra.mxu1 %vm245_vm0, %v625_v10 }
 0x1ba   : >> { %v632_v12 = vpop.f32.mrf.mxu1 }
 0x1bb   : >> { %444 = vst.msk [vmem:[%s441_s8 + $0x8] sm:$0xff] %vm442_vm1, %v632_v12 }
 0x1bc   : >> { %v421_v13 = vpop.f32.mrf.mxu1 }
 0x1bd   : >> { %443 = vst.msk [vmem:[%s441_s8] sm:$0xff] %vm442_vm1, %v421_v13  ;;  %239 = sbr.rel (!%p237_p8) target bundleno = 47 (0x2f), region = 89 }
 0x1be   : >> { %v635_v14 = vpop.f32.mrf.mxu1 }
 0x1bf   : >> { %446 = vst.msk [vmem:[%s441_s8 + $0x18] sm:$0xff] %vm442_vm1, %v635_v14 }
 0x1c0   : >> { %v431_v15 = vpop.f32.mrf.mxu1 }
 0x1c1   : >> { %445 = vst.msk [vmem:[%s441_s8 + $0x10] sm:$0xff] %vm442_vm1, %v431_v15 }
 0x1c2   : > { %751 = shalt.err (!%p748_p7)
}
 0x1c3   : > { %s752_s23 = scalar_lea.hbm %s993_s18, 2048  ;;  %s756_s6 = scalar_lea.hbm %s1047_s3, 4096 }
 0x1c4   : > { %p753_p10 = scmp.ne.s32.totalorder %s993_s18, %s752_s23  ;;  %p757_p2 = scmp.lt.s32.totalorder %s993_s18, %s1047_s3 }
 0x1c5   : > { %p758_p8 = scmp.lt.s32.totalorder %s756_s6, %s752_s23 }
 0x1c6   : > { %p754_p4 = pnand %p753_p10, %p905_p9 }
 0x1c7   : > { %p759_p12 = por %p758_p8, %p757_p2 }
 0x1c8   : > { %p755_p13 = pneg %p754_p4 }
 0x1ca   : > { %p760_p0 = pnand %p759_p12, %p755_p13 }
 0x1cc   : > { %763 = shalt.err (!%p760_p0)
}
 0x1cd   : > { %s832_s8 = smov 128   ;;  %s833_s9 = smov 8  }
 0x1ce   : > { %638 = dma.vmem_to_hbm [thread:$0]  (%p905_p9), %s996_s19, 2048, %s993_s18, %s448_s24, %s832_s8, %s832_s8, %s833_s9  }
 0x1cf PF: > { %s479_s10 = sand.u32 1, %s802_s12   ;;  %p1053_p1 = scmp.ge.s32.totalorder %s822_s17, 2 }
 0x1d0   : > { %s480_s11 = scalar_lea.sflag [#allocation4], %s479_s10 }
 0x1d1   : > { %p645_p3 = pnand %p1053_p1, %p912_p11 }
 0x1d3   : > { %p646_p5 = pneg %p645_p3 }
 0x1d5   : > { %797 = dma.done.wait (%p646_p5), %s480_s11, 2048  }
 0x1d6   : > { %799 = vsyncadd (%p646_p5), %s480_s11, 4294965248  ;;  %s19_s17 = sadd.s32 1, %s822_s17   ;;  %s1054_s12 = smov %s806_s13 }
 0x1d7   : > { %p16_p6 = scmp.ge.s32.totalorder %s19_s17, 4   ;;  %s1055_s13 = smov %s810_s14 }
 0x1d8   : > { %s1056_s14 = smov %s910_s26  ;;  %s1057_s15 = smov %s818_s16 }
 0x1d9   : > { %s1058_s16 = smov %s1060_s20  ;;  %18 = sbr.rel (!%p16_p6) target bundleno = 6 (0x6), region = 100 }
 0x1de   :  { %485 = vsyncpa [#allocation3], 1 }
 0x1df   :  { %487 = vsyncpa [#allocation3 + $0x1], 1 }
 0x1e0   :  { %488 = vsyncpa [#allocation4], 1 }
 0x1e1   :  { %490 = vsyncpa [#allocation4 + $0x1], 1 }

</bundles_post_ra>
